<compile_context>
chip_gen: v7x
topology: tpu7x:2x2x1
jax: 0.10.0
libtpu: 0.0.40
codegen_flags: <defaults>
</compile_context>

<pallas_src>
import numpy as np
import jax
import jax.numpy as jnp
from jax import lax
from jax.experimental import pallas as pl
from jax.experimental.pallas import tpu as pltpu


def make_bp_kernel(max_iters, threshold, pot):
    """BP kernel specialized to num_class == 2 (module default).

    `pot` = (p00, p01, p10, p11) is baked in as Python constants (it is a fixed,
    non-trainable module parameter, like the graph structure)."""
    p00, p01, p10, p11 = pot

    def bp_kernel(p0_ref, p1_ref, sf_ref, sb_ref, dtf_ref, dtb_ref, out_ref):
        p0 = p0_ref[...]          # [N, 1] prior, class 0
        p1 = p1_ref[...]          # [N, 1] prior, class 1
        S_f = sf_ref[...]         # [M, N] one-hot of src of forward edges
        S_b = sb_ref[...]         # [M, N] one-hot of src of backward edges
        DT_f = dtf_ref[...]       # [N, M] one-hot^T of dst of forward edges
        DT_b = dtb_ref[...]       # [N, M] one-hot^T of dst of backward edges

        M = S_f.shape[0]
        N = p0.shape[0]

        # Loop-invariant values hoisted out of the while body.
        lp0 = jnp.log(p0)
        lp1 = jnp.log(p1)

        def matvec(A, x):
            return jnp.dot(A, x, preferred_element_type=jnp.float32)

        def update_half(bel0, bel1, rev0, rev1):
            # ratio = beliefs[src] / messages[rev]; exact division (feeds everything
            # downstream, including the convergence test).
            r0 = bel0 / rev0
            r1 = bel1 / rev1
            # (ratio @ potential) with C == 2, on the VPU (no MXU pass, no XLU).
            m0 = r0 * p00 + r1 * p10
            m1 = r0 * p01 + r1 * p11
            # Row-normalize.  A uniform per-row scale error cancels exactly in the
            # softmax and in the next iteration's re-normalization, so the cheap
            # approximate EUP reciprocal is safe here.
            inv = pl.reciprocal(m0 + m1, approx=True)
            return m0 * inv, m1 * inv

        def body(carry):
            it, _, mf0, mf1, mb0, mb1, b0, b1 = carry

            # --- update_messages: gather beliefs at src nodes (one-hot matmuls) ---
            bf0 = matvec(S_f, b0)
            bf1 = matvec(S_f, b1)
            bb0 = matvec(S_b, b0)
            bb1 = matvec(S_b, b1)
            # reverse(forward k) == backward k is baked into the edge ordering.
            nmf0, nmf1 = update_half(bf0, bf1, mb0, mb1)
            nmb0, nmb1 = update_half(bb0, bb1, mf0, mf1)

            # --- compute_beliefs: log scatter-add via one-hot matmuls + 2-class
            #     softmax done with two-operand VPU ops ---
            l0 = lp0 + matvec(DT_f, jnp.log(nmf0)) + matvec(DT_b, jnp.log(nmb0))
            l1 = lp1 + matvec(DT_f, jnp.log(nmf1)) + matvec(DT_b, jnp.log(nmb1))
            mx = jnp.maximum(l0, l1)
            e0 = jnp.exp(l0 - mx)
            e1 = jnp.exp(l1 - mx)
            s = e0 + e1
            nb0 = e0 / s          # exact normalization (feeds output & convergence)
            nb1 = e1 / s

            # --- convergence flag: any |delta| >= threshold ?  (int32 scalar) ---
            d = jnp.maximum(jnp.abs(nb0 - b0), jnp.abs(nb1 - b1))
            not_conv = jnp.max((d >= threshold).astype(jnp.int32))

            return it + 1, not_conv, nmf0, nmf1, nmb0, nmb1, nb0, nb1

        def cond(carry):
            it, not_conv = carry[0], carry[1]
            return jnp.logical_and(it < max_iters, not_conv > 0)

        half = jnp.full((M, 1), 0.5, dtype=jnp.float32)
        init = (jnp.array(0, dtype=jnp.int32),   # iteration counter
                jnp.array(1, dtype=jnp.int32),   # "not converged" flag
                half, half, half, half,          # messages (fwd/bwd x class)
                p0, p1)                          # beliefs = priors
        final = lax.while_loop(cond, body, init)
        b0, b1 = final[6], final[7]

        # Assemble the [N, 2] output without lane concat: select per lane.
        lane = lax.broadcasted_iota(jnp.int32, (N, 2), 1)
        out_ref[...] = jnp.where(lane == 0, b0, b1).astype(out_ref.dtype)

    return bp_kernel


def bp_forward(priors, src_nodes, dst_nodes, rev_edges, potential,
               max_iters=100, threshold=1e-6):
    """Loopy BP forward.  Graph structure (src/dst/rev_edges) and the potential
    matrix are static module parameters (as in the PyTorch module) and are
    preprocessed on the host; `priors` [N, 2] is the runtime input."""
    src = np.asarray(src_nodes)
    dst = np.asarray(dst_nodes)
    rev = np.asarray(rev_edges)
    pot = np.asarray(potential, dtype=np.float32)

    N, C = priors.shape
    E = int(src.shape[0])
    assert C == 2 and pot.shape == (2, 2), "kernel is specialized to num_class == 2"
    # rev_edges must pair each directed edge with its reverse (symmetric graph).
    assert np.array_equal(rev[rev], np.arange(E))
    assert np.array_equal(src[rev], dst) and np.array_equal(dst[rev], src)

    # Reorder directed edges so that rev(forward k) == backward k.  The reverse-edge
    # gather then disappears: no dense [E, E] permutation matrix, no per-iteration
    # permutation matmul.
    fwd = np.nonzero(np.arange(E) < rev)[0]
    bwd = rev[fwd]
    M = int(fwd.shape[0])
    assert 2 * M == E

    eye = np.eye(N, dtype=np.float32)
    # TODO(synk): for large graphs, swap these dense f32 one-hots for bf16 (exact
    # for 0/1 entries) or scalar-prefetch-driven indexing, batch multiple graphs
    # along a "parallel" grid axis (megacore on v7x), and set
    # pltpu.CompilerParams(vmem_limit_bytes=...) against the per-chip VMEM budget.
    S_f = jnp.asarray(eye[src[fwd]])        # [M, N]
    S_b = jnp.asarray(eye[src[bwd]])        # [M, N]
    DT_f = jnp.asarray(eye[dst[fwd]].T)     # [N, M]
    DT_b = jnp.asarray(eye[dst[bwd]].T)     # [N, M]

    priors_f32 = jnp.asarray(priors, dtype=jnp.float32)
    p0 = priors_f32[:, 0:1]
    p1 = priors_f32[:, 1:2]

    kernel = make_bp_kernel(
        max_iters=max_iters, threshold=threshold,
        pot=(float(pot[0, 0]), float(pot[0, 1]), float(pot[1, 0]), float(pot[1, 1])),
    )
    vmem = pl.BlockSpec(memory_space=pltpu.MemorySpace.VMEM)
    return pl.pallas_call(
        kernel,
        out_shape=jax.ShapeDtypeStruct((N, C), jnp.float32),
        in_specs=[vmem] * 6,
        out_specs=vmem,
    )(p0, p1, S_f, S_b, DT_f, DT_b)


def build_ring_graph(num_nodes):
    """Symmetric ring graph; replicates coalesce() ordering + set_rev_edges()."""
    und = [(i, (i + 1) % num_nodes) for i in range(num_nodes)]
    directed = sorted({(u, v) for (u, v) in und} | {(v, u) for (u, v) in und})
    src = np.array([e[0] for e in directed], dtype=np.int32)
    dst = np.array([e[1] for e in directed], dtype=np.int32)
    idx = {e: i for i, e in enumerate(directed)}
    # rev_edges[e] = index of the reverse directed edge (dst_e -> src_e),
    # identical to InferenceModel.set_rev_edges for a symmetric simple graph.
    rev = np.array([idx[(d, s)] for (s, d) in directed], dtype=np.int64)
    return src, dst, rev


if __name__ == "__main__":
    num_nodes = 8
    num_class = 2
    potential_value = 0.95
    max_iters = 100
    threshold = 1e-6

    src_nodes, dst_nodes, rev_edges = build_ring_graph(num_nodes)  # E = 16 directed

    # potential matrix exactly as in __init__
    off = (1.0 - potential_value) / num_class * (num_class - 1)
    potential = np.full((num_class, num_class), off, dtype=np.float32)
    np.fill_diagonal(potential, potential_value / num_class)

    # deterministic positive priors (rows sum to 1)
    key = jax.random.PRNGKey(0)
    u = jax.random.uniform(key, (num_nodes, num_class), minval=0.1, maxval=1.0,
                           dtype=jnp.float32)
    priors = u / jnp.sum(u, axis=1, keepdims=True)

    beliefs = bp_forward(priors, src_nodes, dst_nodes, rev_edges, potential,
                         max_iters=max_iters, threshold=threshold)
    beliefs = jax.block_until_ready(beliefs)

    b = np.asarray(beliefs)
    assert np.all(np.isfinite(b))
    assert np.allclose(b.sum(axis=1), 1.0, atol=1e-4)
    print("KERNEL_OK")
</pallas_src>

<mosaic_0001>
module attributes {stable_mosaic.version = 11 : i64} {
  func.func @bp_kernel(%arg0: memref<8x1xf32, #tpu.memory_space<vmem>>, %arg1: memref<8x1xf32, #tpu.memory_space<vmem>>, %arg2: memref<8x8xf32, #tpu.memory_space<vmem>>, %arg3: memref<8x8xf32, #tpu.memory_space<vmem>>, %arg4: memref<8x8xf32, #tpu.memory_space<vmem>>, %arg5: memref<8x8xf32, #tpu.memory_space<vmem>>, %arg6: memref<8x2xf32, #tpu.memory_space<vmem>>) attributes {dimension_semantics = [], scalar_prefetch = 0 : i64, scratch_operands = 0 : i64, tpu.core_type = #tpu.core_type<tc>} {
    %c0 = arith.constant 0 : index
    %c0_0 = arith.constant 0 : index
    %0 = vector.load %arg0[%c0, %c0_0] : memref<8x1xf32, #tpu.memory_space<vmem>>, vector<8x1xf32>
    %c0_1 = arith.constant 0 : index
    %c0_2 = arith.constant 0 : index
    %1 = vector.load %arg1[%c0_1, %c0_2] : memref<8x1xf32, #tpu.memory_space<vmem>>, vector<8x1xf32>
    %c0_3 = arith.constant 0 : index
    %c0_4 = arith.constant 0 : index
    %2 = vector.load %arg2[%c0_3, %c0_4] : memref<8x8xf32, #tpu.memory_space<vmem>>, vector<8x8xf32>
    %c0_5 = arith.constant 0 : index
    %c0_6 = arith.constant 0 : index
    %3 = vector.load %arg3[%c0_5, %c0_6] : memref<8x8xf32, #tpu.memory_space<vmem>>, vector<8x8xf32>
    %c0_7 = arith.constant 0 : index
    %c0_8 = arith.constant 0 : index
    %4 = vector.load %arg4[%c0_7, %c0_8] : memref<8x8xf32, #tpu.memory_space<vmem>>, vector<8x8xf32>
    %c0_9 = arith.constant 0 : index
    %c0_10 = arith.constant 0 : index
    %5 = vector.load %arg5[%c0_9, %c0_10] : memref<8x8xf32, #tpu.memory_space<vmem>>, vector<8x8xf32>
    %6 = math.log %0 : vector<8x1xf32>
    %7 = math.log %1 : vector<8x1xf32>
    %cst = arith.constant 5.000000e-01 : f32
    %8 = vector.broadcast %cst : f32 to vector<8x1xf32>
    %c0_i32 = arith.constant 0 : i32
    %c1_i32 = arith.constant 1 : i32
    %9:8 = scf.while (%arg7 = %c0_i32, %arg8 = %c1_i32, %arg9 = %8, %arg10 = %8, %arg11 = %8, %arg12 = %8, %arg13 = %0, %arg14 = %1) : (i32, i32, vector<8x1xf32>, vector<8x1xf32>, vector<8x1xf32>, vector<8x1xf32>, vector<8x1xf32>, vector<8x1xf32>) -> (i32, i32, vector<8x1xf32>, vector<8x1xf32>, vector<8x1xf32>, vector<8x1xf32>, vector<8x1xf32>, vector<8x1xf32>) {
      %c100_i32 = arith.constant 100 : i32
      %19 = arith.cmpi slt, %arg7, %c100_i32 : i32
      %c0_i32_14 = arith.constant 0 : i32
      %20 = arith.cmpi sgt, %arg8, %c0_i32_14 : i32
      %21 = arith.andi %19, %20 : i1
      scf.condition(%21) %arg7, %arg8, %arg9, %arg10, %arg11, %arg12, %arg13, %arg14 : i32, i32, vector<8x1xf32>, vector<8x1xf32>, vector<8x1xf32>, vector<8x1xf32>, vector<8x1xf32>, vector<8x1xf32>
    } do {
    ^bb0(%arg7: i32, %arg8: i32, %arg9: vector<8x1xf32>, %arg10: vector<8x1xf32>, %arg11: vector<8x1xf32>, %arg12: vector<8x1xf32>, %arg13: vector<8x1xf32>, %arg14: vector<8x1xf32>):
      %cst_14 = arith.constant dense<0.000000e+00> : vector<8x1xf32>
      %19 = tpu.matmul %2, %arg13, %cst_14 {dimension_numbers = #tpu.dot_dimension_numbers<[1], [0], [0], [1], [0, 0, 1, 1], [], []>} : vector<8x8xf32>, vector<8x1xf32>, vector<8x1xf32> -> vector<8x1xf32>
      %cst_15 = arith.constant dense<0.000000e+00> : vector<8x1xf32>
      %20 = tpu.matmul %2, %arg14, %cst_15 {dimension_numbers = #tpu.dot_dimension_numbers<[1], [0], [0], [1], [0, 0, 1, 1], [], []>} : vector<8x8xf32>, vector<8x1xf32>, vector<8x1xf32> -> vector<8x1xf32>
      %cst_16 = arith.constant dense<0.000000e+00> : vector<8x1xf32>
      %21 = tpu.matmul %3, %arg13, %cst_16 {dimension_numbers = #tpu.dot_dimension_numbers<[1], [0], [0], [1], [0, 0, 1, 1], [], []>} : vector<8x8xf32>, vector<8x1xf32>, vector<8x1xf32> -> vector<8x1xf32>
      %cst_17 = arith.constant dense<0.000000e+00> : vector<8x1xf32>
      %22 = tpu.matmul %3, %arg14, %cst_17 {dimension_numbers = #tpu.dot_dimension_numbers<[1], [0], [0], [1], [0, 0, 1, 1], [], []>} : vector<8x8xf32>, vector<8x1xf32>, vector<8x1xf32> -> vector<8x1xf32>
      %23 = arith.divf %19, %arg11 : vector<8x1xf32>
      %24 = arith.divf %20, %arg12 : vector<8x1xf32>
      %cst_18 = arith.constant 4.750000e-01 : f32
      %25 = vector.broadcast %cst_18 : f32 to vector<8x1xf32>
      %26 = arith.mulf %23, %25 : vector<8x1xf32>
      %cst_19 = arith.constant 2.500000e-02 : f32
      %27 = vector.broadcast %cst_19 : f32 to vector<8x1xf32>
      %28 = arith.mulf %24, %27 : vector<8x1xf32>
      %29 = arith.addf %26, %28 : vector<8x1xf32>
      %cst_20 = arith.constant 2.500000e-02 : f32
      %30 = vector.broadcast %cst_20 : f32 to vector<8x1xf32>
      %31 = arith.mulf %23, %30 : vector<8x1xf32>
      %cst_21 = arith.constant 4.750000e-01 : f32
      %32 = vector.broadcast %cst_21 : f32 to vector<8x1xf32>
      %33 = arith.mulf %24, %32 : vector<8x1xf32>
      %34 = arith.addf %31, %33 : vector<8x1xf32>
      %35 = arith.addf %29, %34 : vector<8x1xf32>
      %36 = tpu.reciprocal %35 {approx = true} : vector<8x1xf32> -> vector<8x1xf32>
      %37 = arith.mulf %29, %36 : vector<8x1xf32>
      %38 = arith.mulf %34, %36 : vector<8x1xf32>
      %39 = arith.divf %21, %arg9 : vector<8x1xf32>
      %40 = arith.divf %22, %arg10 : vector<8x1xf32>
      %cst_22 = arith.constant 4.750000e-01 : f32
      %41 = vector.broadcast %cst_22 : f32 to vector<8x1xf32>
      %42 = arith.mulf %39, %41 : vector<8x1xf32>
      %cst_23 = arith.constant 2.500000e-02 : f32
      %43 = vector.broadcast %cst_23 : f32 to vector<8x1xf32>
      %44 = arith.mulf %40, %43 : vector<8x1xf32>
      %45 = arith.addf %42, %44 : vector<8x1xf32>
      %cst_24 = arith.constant 2.500000e-02 : f32
      %46 = vector.broadcast %cst_24 : f32 to vector<8x1xf32>
      %47 = arith.mulf %39, %46 : vector<8x1xf32>
      %cst_25 = arith.constant 4.750000e-01 : f32
      %48 = vector.broadcast %cst_25 : f32 to vector<8x1xf32>
      %49 = arith.mulf %40, %48 : vector<8x1xf32>
      %50 = arith.addf %47, %49 : vector<8x1xf32>
      %51 = arith.addf %45, %50 : vector<8x1xf32>
      %52 = tpu.reciprocal %51 {approx = true} : vector<8x1xf32> -> vector<8x1xf32>
      %53 = arith.mulf %45, %52 : vector<8x1xf32>
      %54 = arith.mulf %50, %52 : vector<8x1xf32>
      %55 = math.log %37 : vector<8x1xf32>
      %cst_26 = arith.constant dense<0.000000e+00> : vector<8x1xf32>
      %56 = tpu.matmul %4, %55, %cst_26 {dimension_numbers = #tpu.dot_dimension_numbers<[1], [0], [0], [1], [0, 0, 1, 1], [], []>} : vector<8x8xf32>, vector<8x1xf32>, vector<8x1xf32> -> vector<8x1xf32>
      %57 = arith.addf %6, %56 : vector<8x1xf32>
      %58 = math.log %53 : vector<8x1xf32>
      %cst_27 = arith.constant dense<0.000000e+00> : vector<8x1xf32>
      %59 = tpu.matmul %5, %58, %cst_27 {dimension_numbers = #tpu.dot_dimension_numbers<[1], [0], [0], [1], [0, 0, 1, 1], [], []>} : vector<8x8xf32>, vector<8x1xf32>, vector<8x1xf32> -> vector<8x1xf32>
      %60 = arith.addf %57, %59 : vector<8x1xf32>
      %61 = math.log %38 : vector<8x1xf32>
      %cst_28 = arith.constant dense<0.000000e+00> : vector<8x1xf32>
      %62 = tpu.matmul %4, %61, %cst_28 {dimension_numbers = #tpu.dot_dimension_numbers<[1], [0], [0], [1], [0, 0, 1, 1], [], []>} : vector<8x8xf32>, vector<8x1xf32>, vector<8x1xf32> -> vector<8x1xf32>
      %63 = arith.addf %7, %62 : vector<8x1xf32>
      %64 = math.log %54 : vector<8x1xf32>
      %cst_29 = arith.constant dense<0.000000e+00> : vector<8x1xf32>
      %65 = tpu.matmul %5, %64, %cst_29 {dimension_numbers = #tpu.dot_dimension_numbers<[1], [0], [0], [1], [0, 0, 1, 1], [], []>} : vector<8x8xf32>, vector<8x1xf32>, vector<8x1xf32> -> vector<8x1xf32>
      %66 = arith.addf %63, %65 : vector<8x1xf32>
      %67 = arith.maximumf %60, %66 : vector<8x1xf32>
      %68 = arith.subf %60, %67 : vector<8x1xf32>
      %69 = math.exp %68 : vector<8x1xf32>
      %70 = arith.subf %66, %67 : vector<8x1xf32>
      %71 = math.exp %70 : vector<8x1xf32>
      %72 = arith.addf %69, %71 : vector<8x1xf32>
      %73 = arith.divf %69, %72 : vector<8x1xf32>
      %74 = arith.divf %71, %72 : vector<8x1xf32>
      %75 = arith.subf %73, %arg13 : vector<8x1xf32>
      %76 = math.absf %75 : vector<8x1xf32>
      %77 = arith.subf %74, %arg14 : vector<8x1xf32>
      %78 = math.absf %77 : vector<8x1xf32>
      %79 = arith.maximumf %76, %78 : vector<8x1xf32>
      %cst_30 = arith.constant 9.99999997E-7 : f32
      %80 = vector.broadcast %cst_30 : f32 to vector<8x1xf32>
      %81 = arith.cmpf oge, %79, %80 : vector<8x1xf32>
      %82 = arith.extui %81 : vector<8x1xi1> to vector<8x1xi32>
      %83 = vector.shape_cast %82 : vector<8x1xi32> to vector<1x8x1xi32>
      %cst_31 = arith.constant dense<-2147483648> : vector<1xi32>
      %84 = vector.multi_reduction <maxsi>, %83, %cst_31 [1, 2] : vector<1x8x1xi32> to vector<1xi32>
      %85 = vector.shape_cast %84 : vector<1xi32> to vector<1x1x1xi32>
      %86 = vector.extract %85[0, 0, 0] : i32 from vector<1x1x1xi32>
      %c1_i32_32 = arith.constant 1 : i32
      %87 = arith.addi %arg7, %c1_i32_32 : i32
      scf.yield %87, %86, %37, %38, %53, %54, %73, %74 : i32, i32, vector<8x1xf32>, vector<8x1xf32>, vector<8x1xf32>, vector<8x1xf32>, vector<8x1xf32>, vector<8x1xf32>
    }
    %10 = tpu.iota {dimensions = array<i32: 1>} : vector<8x2xi32>
    %c0_i32_11 = arith.constant 0 : i32
    %11 = vector.broadcast %c0_i32_11 : i32 to vector<8x2xi32>
    %12 = arith.cmpi eq, %10, %11 : vector<8x2xi32>
    %13 = vector.shape_cast %9#6 : vector<8x1xf32> to vector<8x1xf32>
    %14 = vector.broadcast %13 : vector<8x1xf32> to vector<8x2xf32>
    %15 = vector.shape_cast %9#7 : vector<8x1xf32> to vector<8x1xf32>
    %16 = vector.broadcast %15 : vector<8x1xf32> to vector<8x2xf32>
    %17 = arith.select %12, %14, %16 : vector<8x2xi1>, vector<8x2xf32>
    %c0_12 = arith.constant 0 : index
    %c0_13 = arith.constant 0 : index
    %18 = vector.load %arg6[%c0_12, %c0_13] : memref<8x2xf32, #tpu.memory_space<vmem>>, vector<8x2xf32>
    tpu.vector_store %arg6[%c0_12, %c0_13], %17 {strides = array<i32>} : memref<8x2xf32, #tpu.memory_space<vmem>>, vector<8x2xf32>,
    return
  }
}

</mosaic_0001>

<bundles_post_ra>
// kernel: tpu_custom_call.1
= control target key start
LH: loop header
LB: loop body
LE: loop exit
PB: predicated region body
PF: predicated region fallthrough
CT: control target
= control target key end

     0   :  { %v1044_v10 = vmov 0.5   ;;  %v1046_v11 = vmov 0.5   ;;  %v1048_v12 = vmov 0.5   ;;  %v1050_v13 = vmov 0.5   ;;  %s1149_s0 = inlined_call_operand.vmem [shape: f32[8,1], index: 0, kind: input, shape index: {}]   ;;  %s1150_s1 = inlined_call_operand.vmem [shape: f32[8,1], index: 1, kind: input, shape index: {}]   ;;  %s1151_s2 = inlined_call_operand.vmem [shape: f32[8,8], index: 2, kind: input, shape index: {}]   ;;  %s1152_s3 = inlined_call_operand.vmem [shape: f32[8,8], index: 3, kind: input, shape index: {}]   ;;  %s1153_s4 = inlined_call_operand.vmem [shape: f32[8,8], index: 4, kind: input, shape index: {}]   ;;  %s1154_s5 = inlined_call_operand.vmem [shape: f32[8,8], index: 5, kind: input, shape index: {}]   ;;  %s1155_s6 = inlined_call_operand.vmem [shape: f32[8,2], index: 6, kind: output, shape index: {}]  }
   0x1   :  { %v23_v0 = vld [vmem:[%s1149_s0] sm:$0xff]  }
   0x2   :  { %v24_v1 = vld [vmem:[%s1150_s1] sm:$0xff]   ;;  %884 = vlog2.f32 %v23_v0  ;;  %s1052_s1 = smov 0  }
   0x3   :  { %v1019_v2 = vld [vmem:[%s1151_s2] sm:$0xff]  ;;  %886 = vlog2.f32 %v24_v1 }
   0x4   :  { %v1024_v3 = vld [vmem:[%s1152_s3] sm:$0xff] }
   0x5   :  { %v1029_v4 = vld [vmem:[%s1153_s4] sm:$0xff] }
   0x6   :  { %v1034_v5 = vld [vmem:[%s1154_s5] sm:$0xff] }
   0xc   :  { %v885_v6 = vpop.eup %884 }
   0xd   :  { %v887_v7 = vpop.eup %886  ;;  %v1036_v8 = vmul.f32 0.6931472, %v885_v6 }
   0xe   :  { %v1038_v9 = vmul.f32 0.6931472, %v887_v7 }
   0xf LB: > { %v971_v14 = vmov 0.0   ;;  %vm48_vm0 = vcmask 64512   ;;  %vm972_vm1 = vmmov 0   ;;  %888 = vrcp.f32 %v957_v11  ;;  %s705_s1 = sadd.s32 1, %s969_s1   ;;  %s969_s1 = sphi %s1052_s1, %s705_s1   ;;  %v965_v13 = vphi %v1050_v13, %v1097_v13   ;;  %v961_v12 = vphi %v1048_v12, %v1099_v12   ;;  %v957_v11 = vphi %v1046_v11, %v1103_v11   ;;  %v953_v10 = vphi %v1044_v10, %v1105_v10   ;;  %v949_v0 = vphi %v23_v0, %v1157_v0   ;;  %v945_v1 = vphi %v24_v1, %v1156_v1  }
  0x10   : > { %776 = vmatprep.subr.mxu0 %v971_v14  ;;  %781 = vmatprep.subr.mxu1 %v971_v14  ;;  %890 = vrcp.f32 %v953_v10  ;;  %vm679_vm2 = vcmask 7168   ;;  %p42_p0 = scmp.lt.s32.totalorder %s705_s1, 100 }
  0x11   : > { %777 = vmatpush3.msra.mxu0 %v949_v0  ;;  %778 = vmatprep.mubr.msk.f32.mxu0 %vm972_vm1, %v971_v14  ;;  %892 = vrcp.f32 %v965_v13 }
  0x12   : > { %782 = vmatpush3.msra.mxu1 %v945_v1  ;;  %783 = vmatprep.mubr.msk.f32.mxu1 %vm972_vm1, %v971_v14  ;;  %894 = vrcp.f32 %v961_v12 }
  0x13   : > { %779 = vmatmul.mubr.msk.f32.vlgmr.msra.gmra.mrb[0].mxu0 %vm48_vm0, %v1019_v2  ;;  %784 = vmatmul.mubr.msk.f32.vlgmr.msra.gmra.mrb[0].mxu1 %vm48_vm0, %v1019_v2 }
  0x14   : > { %786 = vmatprep.subr.mxu0 %v971_v14  ;;  %791 = vmatprep.subr.mxu1 %v971_v14 }
  0x15   : > { %787 = vmatpush3.msra.mxu0 %v949_v0  ;;  %788 = vmatprep.mubr.msk.f32.mxu0 %vm972_vm1, %v971_v14 }
  0x16   : > { %792 = vmatpush3.msra.mxu1 %v945_v1  ;;  %793 = vmatprep.mubr.msk.f32.mxu1 %vm972_vm1, %v971_v14 }
  0x17   : > { %789 = vmatmul.mubr.msk.f32.vlgmr.msra.gmra.mrb[2].mxu0 %vm48_vm0, %v1024_v3  ;;  %794 = vmatmul.mubr.msk.f32.vlgmr.msra.gmra.mrb[2].mxu1 %vm48_vm0, %v1024_v3 }
  0x18   : > { %796 = vmatprep.subr.mxu0 %v971_v14  ;;  %806 = vmatprep.subr.mxu1 %v971_v14 }
  0x19   : > { %798 = vmatprep.mubr.msk.f32.mxu0 %vm972_vm1, %v971_v14  ;;  %808 = vmatprep.mubr.msk.f32.mxu1 %vm972_vm1, %v971_v14  ;;  %v889_v15 = vpop.eup %888 }
  0x1a   : > { %v891_v16 = vpop.eup %890 }
  0x1b   : > { %v893_v19 = vpop.eup %892 }
  0x1c   : > { %v895_v24 = vpop.eup %894 }
  0xe6   : > { %v118_v17 = vpop.f32.mrb[0].mxu0  ;;  %v188_v18 = vpop.f32.mrb[0].mxu1 }
  0xe7   : > { %v336_v20 = vmul.f32 %v889_v15, %v118_v17  ;;  %v338_v21 = vmul.f32 %v891_v16, %v188_v18  ;;  %v780_v22 = vpop.f32.mrb[1].mxu0  ;;  %v785_v23 = vpop.f32.mrb[1].mxu1 }
  0xe9   : > { %v339_v25 = vmul.f32 0.475, %v336_v20  ;;  %v342_v26 = vmul.f32 0.025, %v336_v20  ;;  %v340_v27 = vmul.f32 0.025, %v338_v21 }
  0xea   : > { %v343_v28 = vmul.f32 0.475, %v338_v21  ;;  %v261_v29 = vpop.f32.mrb[2].mxu0  ;;  %v331_v30 = vpop.f32.mrb[2].mxu1 }
  0xeb   : > { %v341_v31 = vadd.f32 %v340_v27, %v339_v25  ;;  %v350_v32 = vmul.f32 %v893_v19, %v261_v29  ;;  %v352_v33 = vmul.f32 %v895_v24, %v331_v30  ;;  %v790_v34 = vpop.f32.mrb[3].mxu0  ;;  %v795_v35 = vpop.f32.mrb[3].mxu1  ;;  %v973_v25 = vmov 0  }
  0xec   : > { %v344_v36 = vadd.f32 %v343_v28, %v342_v26 }
  0xed   : > { %v353_v37 = vmul.f32 0.475, %v350_v32  ;;  %v356_v38 = vmul.f32 0.025, %v350_v32  ;;  %v354_v39 = vmul.f32 0.025, %v352_v33 }
  0xee   : > { %v345_v40 = vadd.f32 %v344_v36, %v341_v31  ;;  %v357_v41 = vmul.f32 0.475, %v352_v33 }
  0xef   : > { %v355_v42 = vadd.f32 %v354_v39, %v353_v37 }
  0xf0   : > { %896 = vrcp.f32 %v345_v40  ;;  %v358_v43 = vadd.f32 %v357_v41, %v356_v38 }
  0xf2   : > { %v359_v44 = vadd.f32 %v358_v43, %v355_v42 }
  0xf4   : > { %898 = vrcp.f32 %v359_v44 }
  0xfa   : > { %v897_v45 = vpop.eup %896 }
  0xfb   : > { %v1097_v13 = vmul.f32 %v897_v45, %v341_v31   ;;  %v1099_v12 = vmul.f32 %v897_v45, %v344_v36  }
  0xfd   : > { %900 = vlog2.f32 %v1097_v13 }
  0xfe   : > { %v899_v46 = vpop.eup %898  ;;  %902 = vlog2.f32 %v1099_v12 }
  0xff   : > { %v1103_v11 = vmul.f32 %v899_v46, %v355_v42   ;;  %v1105_v10 = vmul.f32 %v899_v46, %v358_v43  }
 0x101   : > { %904 = vlog2.f32 %v1103_v11 }
 0x102   : > { %906 = vlog2.f32 %v1105_v10 }
 0x107   : > { %v901_v47 = vpop.eup %900 }
 0x108   : > { %v903_v48 = vpop.eup %902  ;;  %v364_v49 = vmul.f32 0.6931472, %v901_v47 }
 0x109   : > { %v516_v50 = vmul.f32 0.6931472, %v903_v48 }
 0x10a   : > { %797 = vmatpush3.msra.mxu0 %v364_v49 }
 0x10b   : > { %v905_v51 = vpop.eup %904  ;;  %807 = vmatpush3.msra.mxu1 %v516_v50  ;;  %799 = vmatmul.mubr.msk.f32.vlgmr.msra.gmra.mrb[4].mxu0 %vm48_vm0, %v1029_v4 }
 0x10c   : > { %v907_v52 = vpop.eup %906  ;;  %809 = vmatmul.mubr.msk.f32.vlgmr.msra.gmra.mrb[4].mxu1 %vm48_vm0, %v1029_v4  ;;  %801 = vmatprep.subr.mxu0 %v971_v14  ;;  %v440_v53 = vmul.f32 0.6931472, %v905_v51 }
 0x10d   : > { %811 = vmatprep.subr.mxu1 %v971_v14  ;;  %v589_v54 = vmul.f32 0.6931472, %v907_v52  ;;  %803 = vmatprep.mubr.msk.f32.mxu0 %vm972_vm1, %v971_v14 }
 0x10e   : > { %802 = vmatpush3.msra.mxu0 %v440_v53  ;;  %813 = vmatprep.mubr.msk.f32.mxu1 %vm972_vm1, %v971_v14 }
 0x10f   : > { %812 = vmatpush3.msra.mxu1 %v589_v54 }
 0x113   : > { %804 = vmatmul.mubr.msk.f32.vlgmr.msra.gmra.mrb[4].mxu0 %vm48_vm0, %v1034_v5 }
 0x114   : > { %814 = vmatmul.mubr.msk.f32.vlgmr.msra.gmra.mrb[4].mxu1 %vm48_vm0, %v1034_v5 }
 0x1e6   : > { %v510_v55 = vpop.f32.mrb[4].mxu0 }
 0x1e7   : > { %v816_v56 = vadd.f32 %v510_v55, %v1036_v8  ;;  %v656_v57 = vpop.f32.mrb[4].mxu1  ;;  %v805_v58 = vpop.f32.mrb[5].mxu0 }
 0x1e8   : > { %v817_v59 = vadd.f32 %v656_v57, %v1038_v9  ;;  %v815_v60 = vpop.f32.mrb[5].mxu1 }
 0x1ea   : > { %v661_v61 = vmax.f32 %v816_v56, %v817_v59 }
 0x1ec   : > { %v662_v62 = vsub.f32 %v816_v56, %v661_v61  ;;  %v665_v63 = vsub.f32 %v817_v59, %v661_v61 }
 0x1ee   : > { %v663_v6 = vmul.f32 1.442695, %v662_v62  ;;  %v666_v7 = vmul.f32 1.442695, %v665_v63 }
 0x1f0   : > { %908 = vpow2.f32 %v663_v6 }
 0x1f1   : > { %910 = vpow2.f32 %v666_v7 }
 0x1fa   : > { %v909_v14 = vpop.eup %908 }
 0x1fb   : > { %v911_v15 = vpop.eup %910 }
 0x1fc   : > { %v668_v16 = vadd.f32 %v911_v15, %v909_v14 }
 0x1fe   : > { %912 = vrcp.f32 %v668_v16 }
 0x208   : > { %v913_v17 = vpop.eup %912 }
 0x209   : > { %v670_v18 = vmul.f32 %v913_v17, %v909_v14   ;;  %v671_v19 = vmul.f32 %v913_v17, %v911_v15  }
 0x20b   : > { %v672_v20 = vsub.f32 %v670_v18, %v949_v0  ;;  %v674_v21 = vsub.f32 %v671_v19, %v945_v1 }
 0x20d   : > { %v673_v22 = vand.u32 2147483647, %v672_v20  ;;  %v675_v23 = vand.u32 2147483647, %v674_v21 }
 0x20f   : > { %v676_v24 = vmax.f32.f32 %v673_v22, %v675_v23 }
 0x211   : > { %vm677_vm3 = vcmp.ge.f32.partialorder %v676_v24, 1e-06 }
 0x212   : > { %v678_v26 = vsel %vm677_vm3, 1, %v973_v25 }
 0x213   : > { %v680_v27 = vsel %vm679_vm2, %v678_v26, 2147483648 }
 0x214   : > { %v682_v28 = vshra.s32 %v680_v27, 16  ;;  %v681_v30 = vand.u32 65535, %v680_v27 }
 0x216   : > { %v684_v29 = vcvt.s32.f32 %v682_v28  ;;  %v683_v32 = vcvt.s32.f32 %v681_v30 }
 0x218   : > { %685 = vmax.xlane.f32.xlu0 %v684_v29 }
 0x2a5   : > { %v686_v31 = vpop.xlane.xlu0 %685 }
 0x2a6   : > { %vm687_vm4 = vcmp.eq.f32.partialorder %v684_v29, %v686_v31  ;;  %v692_v0 = vcvt.f32.s32 %v686_v31 }
 0x2a7   : > { %v688_v33 = vsel %vm687_vm4, %v683_v32, -inf }
 0x2a8   : > { %689 = vmax.xlane.f32.xlu0 %v688_v33  ;;  %v693_v34 = vshll.u32 %v692_v0, 16  ;;  %v1157_v0 = vmov %v670_v18 }
 0x335   : > { %v690_v1 = vpop.xlane.xlu0 %689 }
 0x336   : > { %v691_v35 = vcvt.f32.s32 %v690_v1  ;;  %v1156_v1 = vmov %v671_v19 }
 0x338   : > { %v694_v36 = vadd.s32 %v693_v34, %v691_v35 }
 0x33a   : > { %v695_v37 = vrot.slane %v694_v36, 4 }
 0x33c   : > { %vm696_vm5 = vcmp.gt.s32.totalorder %v694_v36, %v695_v37 }
 0x33d   : > { %v697_v38 = vsel %vm696_vm5, %v694_v36, %v695_v37 }
 0x33e   : > { %v698_v39 = vrot.slane %v697_v38, 2 }
 0x340   : > { %vm699_vm6 = vcmp.gt.s32.totalorder %v697_v38, %v698_v39 }
 0x341   : > { %v700_v40 = vsel %vm699_vm6, %v697_v38, %v698_v39 }
 0x342   : > { %v701_v41 = vrot.slane %v700_v40, 1 }
 0x344   : > { %vm702_vm7 = vcmp.gt.s32.totalorder %v700_v40, %v701_v41 }
 0x345   : > { %v703_v42 = vsel %vm702_vm7, %v700_v40, %v701_v41 }
 0x346   : > { %822 = vpush %v703_v42 }
 0x377   : > { %s823_s2 = spop %822 }
 0x378   : > { %p43_p1 = scmp.gt.s32.totalorder %s823_s2, 0 }
 0x37a   : > { %p44_p2 = pnand %p43_p1, %p42_p0 }
 0x37b   :  { %v974_v43 = vmov (%p44_p2), 0   ;;  %v706_v44 = vlaneseq (%p44_p2)  ;;  %vm720_vm9 = vcmask (%p44_p2), 15360  }
 0x37c   :  { %47 = sbr.rel (!%p44_p2) target bundleno = 15 (0xf), region = 51  ;;  %914 = vset.pattern.permute.xlu0 (%p44_p2), %v974_v43 }
 0x37d   :  { %711 = vperm.xlu0 (%p44_p2), %914, %v670_v18   ;;  %v707_v45 = vand.u32 (%p44_p2), 127, %v706_v44 }
 0x37f   :  { %vm708_vm8 = vcmp.eq.s32.totalorder (%p44_p2), %v707_v45, 0 }
 0x381   :  { %716 = vperm.xlu0 (%p44_p2), %914, %v671_v19  }
 0x3fc   :  { %v712_v46 = vpop.permute.xlu0 %711 }
 0x400   :  { %v717_v47 = vpop.permute.xlu0 %716 }
 0x401   :  { %v719_v48 = vsel %vm708_vm8, %v712_v46, %v717_v47 }
 0x402   :  { %721 = vst.msk [vmem:[%s1155_s6] sm:$0xff] %vm720_vm9, %v719_v48 }

</bundles_post_ra>
